<compile_context>
chip_gen: v5e
topology: v5e:2x2
jax: 0.10.0
libtpu: 0.0.40
codegen_flags: <defaults>
</compile_context>

<pallas_src>
import functools
import math

import jax
import jax.numpy as jnp
from jax import lax
from jax.experimental import pallas as pl
from jax.experimental.pallas import tpu as pltpu


def _mlp_kernel(x_ref, w_in_ref, b_in_ref, w_res_ref, b_res_ref,
                w_out_ref, b_out_ref, o_ref, *, h_layers, vpu_input_proj):
    x = x_ref[...]                                    # (T, c_in) f32
    tile_rows = x.shape[0]
    h_ch = w_in_ref.shape[1]

    if vpu_input_proj:
        # c_in is tiny (<= 8): the MXU would pad K up to 128 anyway, so do the
        # input projection as c_in broadcast-FMA steps on the VPU (VALU slots
        # have slack) and save one full padded MXU pass per tile.
        w_in = w_in_ref[...]                          # (c_in, H)
        h = jnp.broadcast_to(b_in_ref[...], (tile_rows, h_ch)).astype(jnp.float32)
        for k in range(x.shape[1]):
            h = h + x[:, k:k + 1] * w_in[k:k + 1, :]
    else:
        h = jnp.dot(x, w_in_ref[...],
                    preferred_element_type=jnp.float32) + b_in_ref[...]

    # Residual blocks: ReLU(Linear(h)) + h.
    def block(l, h):
        y = jnp.dot(h, w_res_ref[l],
                    preferred_element_type=jnp.float32) + b_res_ref[l]
        return jnp.maximum(y, 0.0) + h

    if h_layers <= 4:
        for l in range(h_layers):
            h = block(l, h)
    else:
        # Deeper stacks: bound live ranges while keeping scheduler visibility.
        h = lax.fori_loop(0, h_layers, block, h, unroll=True)

    o_ref[...] = (jnp.dot(h, w_out_ref[...],
                          preferred_element_type=jnp.float32)
                  + b_out_ref[...]).astype(o_ref.dtype)


def _round_up(v, m):
    return -(-int(v) // int(m)) * int(m)


def _padded_bytes(shape, itemsize=4):
    """VMEM footprint of an f32 buffer after (8, 128) tile padding."""
    s = list(shape)
    if len(s) < 2:
        s = [1] * (2 - len(s)) + s
    lead = 1
    for d in s[:-2]:
        lead *= int(d)
    return lead * _round_up(s[-2], 8) * _round_up(s[-1], 128) * itemsize


def downscaling_mlp(x, params, *, tile_rows=1024):
    """x: [N, in_channels] float32. params: dict of pre-transposed f32 weights."""
    w_in = params["w_in"].astype(jnp.float32)
    b_in = params["b_in"].astype(jnp.float32)
    w_res = params["w_res"].astype(jnp.float32)
    b_res = params["b_res"].astype(jnp.float32)
    w_out = params["w_out"].astype(jnp.float32)
    b_out = params["b_out"].astype(jnp.float32)

    n_rows, c_in = x.shape
    h_layers, h_ch, _ = w_res.shape
    c_out = w_out.shape[1]

    # Row tile: big enough to amortize the fixed per-grid-step overhead (the
    # carried activation lives in VMEM, only ~tile_rows*H*4 bytes), but capped
    # so the grid keeps >= 2 steps when possible (v7x: 2 TCs share the
    # "parallel" axis; a single-step grid would idle one core).
    tile_rows = max(8, min(int(tile_rows), 2048))
    if n_rows > 8:
        tile_rows = min(tile_rows, _round_up(pl.cdiv(n_rows, 2), 8))
    tile_rows = max(8, tile_rows)
    n_pad = pl.cdiv(n_rows, tile_rows) * tile_rows
    x_p = x if n_pad == n_rows else jnp.pad(x, ((0, n_pad - n_rows), (0, 0)))

    grid = (n_pad // tile_rows,)

    vpu_input_proj = c_in <= 8

    flops = int(2 * n_pad * (c_in * h_ch + h_layers * h_ch * h_ch + h_ch * c_out))
    bytes_accessed = int(
        x_p.size * x_p.dtype.itemsize
        + n_pad * c_out * x.dtype.itemsize
        + sum(int(a.size) * a.dtype.itemsize
              for a in (w_in, b_in, w_res, b_res, w_out, b_out)))

    # VMEM budget: double-buffered x/out tiles + (double-buffered) resident
    # weights + headroom for activation temporaries. Clamp to [16, 32] MiB so
    # it fits v7x's 64 MiB/TC physical VMEM with room for compiler temporaries.
    vmem_est = (
        2 * (_padded_bytes((tile_rows, c_in)) + _padded_bytes((tile_rows, c_out)))
        + 2 * sum(_padded_bytes(a.shape) for a in
                  (w_in, b_in, w_res, b_res, w_out, b_out))
        + 8 * _padded_bytes((tile_rows, h_ch)))
    vmem_limit = min(32 * 1024 * 1024,
                     max(16 * 1024 * 1024, _round_up(vmem_est, 1024 * 1024)))

    kernel = functools.partial(_mlp_kernel, h_layers=h_layers,
                               vpu_input_proj=vpu_input_proj)

    out = pl.pallas_call(
        kernel,
        out_shape=jax.ShapeDtypeStruct((n_pad, c_out), x.dtype),
        grid_spec=pl.GridSpec(
            grid=grid,
            in_specs=[
                pl.BlockSpec((tile_rows, c_in), lambda i: (i, 0)),          # x tile
                pl.BlockSpec((c_in, h_ch), lambda i: (0, 0)),               # w_in
                pl.BlockSpec((1, h_ch), lambda i: (0, 0)),                  # b_in
                pl.BlockSpec((h_layers, h_ch, h_ch), lambda i: (0, 0, 0)),  # w_res
                pl.BlockSpec((h_layers, 1, h_ch), lambda i: (0, 0, 0)),     # b_res
                pl.BlockSpec((h_ch, c_out), lambda i: (0, 0)),              # w_out
                pl.BlockSpec((1, c_out), lambda i: (0, 0)),                 # b_out
            ],
            # Keep the narrow c_out output spec: masked stores are not the
            # bottleneck, and lane-padding it would ~42x the HBM writeback.
            out_specs=pl.BlockSpec((tile_rows, c_out), lambda i: (i, 0)),
        ),
        compiler_params=pltpu.CompilerParams(
            dimension_semantics=("parallel",),
            vmem_limit_bytes=int(vmem_limit)),
        cost_estimate=pl.CostEstimate(
            flops=flops, transcendentals=0, bytes_accessed=bytes_accessed),
    )(x_p, w_in, b_in, w_res, b_res, w_out, b_out)

    return out[:n_rows] if n_pad != n_rows else out


def init_params(key, in_channels, out_channels, h_channels, h_layers):
    """Deterministic synthetic init (PyTorch-Linear-like uniform scaling)."""
    ks = jax.random.split(key, 3 + 2 * h_layers)

    def linear(k, fan_in, fan_out):
        lim = 1.0 / math.sqrt(float(fan_in))
        kw, kb = jax.random.split(k)
        # Stored already transposed: (fan_in, fan_out), so kernel does x @ W + b.
        w = jax.random.uniform(kw, (fan_in, fan_out), jnp.float32, -lim, lim)
        b = jax.random.uniform(kb, (1, fan_out), jnp.float32, -lim, lim)
        return w, b

    w_in, b_in = linear(ks[0], in_channels, h_channels)
    w_res_list, b_res_list = [], []
    for l in range(h_layers):
        w, b = linear(ks[1 + l], h_channels, h_channels)
        w_res_list.append(w)
        b_res_list.append(b)
    w_out, b_out = linear(ks[1 + h_layers], h_channels, out_channels)
    return {
        "w_in": w_in, "b_in": b_in,
        "w_res": jnp.stack(w_res_list, axis=0),          # (L, H, H)
        "b_res": jnp.stack(b_res_list, axis=0),          # (L, 1, H)
        "w_out": w_out, "b_out": b_out,
    }


def reference_mlp(x, params):
    """Pure-JAX f32 reference of the PyTorch forward."""
    h = x @ params["w_in"] + params["b_in"]
    for l in range(params["w_res"].shape[0]):
        y = h @ params["w_res"][l] + params["b_res"][l]
        h = jnp.maximum(y, 0.0) + h
    return h @ params["w_out"] + params["b_out"]


if __name__ == "__main__":
    # Small shapes: batch=2, seq=8 station points, in_channels=4,
    # h_channels=32, h_layers=2, out_channels=3.
    batch, seq = 2, 8
    in_channels, out_channels, h_channels, h_layers = 4, 3, 32, 2

    key = jax.random.PRNGKey(0)
    k_x, k_p, k_x2 = jax.random.split(key, 3)
    x = jax.random.normal(k_x, (batch, seq, in_channels), jnp.float32)
    params = init_params(k_p, in_channels, out_channels, h_channels, h_layers)

    x_flat = x.reshape(batch * seq, in_channels)
    y_flat = downscaling_mlp(x_flat, params)
    y = y_flat.reshape(batch, seq, out_channels)
    jax.block_until_ready(y)

    # All matmuls run in f32 with f32 accumulation -> tight parity with the
    # pure-f32 reference of the PyTorch module.
    y_ref = reference_mlp(x_flat, params).reshape(batch, seq, out_channels)
    assert jnp.allclose(y, y_ref, atol=2e-3, rtol=2e-3), "mismatch vs reference"

    # Second check: ragged row count (not a multiple of the tile) exercises the
    # row-padding path and the >=2-step grid logic.
    x2 = jax.random.normal(k_x2, (37, in_channels), jnp.float32)
    y2 = downscaling_mlp(x2, params)
    jax.block_until_ready(y2)
    y2_ref = reference_mlp(x2, params)
    assert jnp.allclose(y2, y2_ref, atol=2e-3, rtol=2e-3), "mismatch (ragged rows)"

    print("KERNEL_OK")
</pallas_src>

<mosaic_0001>
module attributes {stable_mosaic.version = 11 : i64} {
  func.func @_mlp_kernel(%arg0: i32, %arg1: memref<8x4xf32, #tpu.memory_space<vmem>>, %arg2: memref<4x32xf32, #tpu.memory_space<vmem>>, %arg3: memref<1x32xf32, #tpu.memory_space<vmem>>, %arg4: memref<2x32x32xf32, #tpu.memory_space<vmem>>, %arg5: memref<2x1x32xf32, #tpu.memory_space<vmem>>, %arg6: memref<32x3xf32, #tpu.memory_space<vmem>>, %arg7: memref<1x3xf32, #tpu.memory_space<vmem>>, %arg8: memref<8x3xf32, #tpu.memory_space<vmem>>) attributes {dimension_semantics = [#tpu.dimension_semantics<parallel>], iteration_bounds = array<i64: 2>, scalar_prefetch = 0 : i64, scratch_operands = 0 : i64, tpu.core_type = #tpu.core_type<tc>, window_params = [{transform_indices = @transform_0, window_bounds = array<i64: 8, 4>}, {pipeline_mode = #tpu.pipeline_mode<synchronous>, transform_indices = @transform_1, window_bounds = array<i64: 4, 32>}, {pipeline_mode = #tpu.pipeline_mode<synchronous>, transform_indices = @transform_2, window_bounds = array<i64: 1, 32>}, {pipeline_mode = #tpu.pipeline_mode<synchronous>, transform_indices = @transform_3, window_bounds = array<i64: 2, 32, 32>}, {pipeline_mode = #tpu.pipeline_mode<synchronous>, transform_indices = @transform_4, window_bounds = array<i64: 2, 1, 32>}, {pipeline_mode = #tpu.pipeline_mode<synchronous>, transform_indices = @transform_5, window_bounds = array<i64: 32, 3>}, {pipeline_mode = #tpu.pipeline_mode<synchronous>, transform_indices = @transform_6, window_bounds = array<i64: 1, 3>}, {transform_indices = @transform_7, window_bounds = array<i64: 8, 3>}]} {
    %c0 = arith.constant 0 : index
    %c0_0 = arith.constant 0 : index
    %0 = vector.load %arg1[%c0, %c0_0] : memref<8x4xf32, #tpu.memory_space<vmem>>, vector<8x4xf32>
    %c0_1 = arith.constant 0 : index
    %c0_2 = arith.constant 0 : index
    %1 = vector.load %arg2[%c0_1, %c0_2] : memref<4x32xf32, #tpu.memory_space<vmem>>, vector<4x32xf32>
    %c0_3 = arith.constant 0 : index
    %c0_4 = arith.constant 0 : index
    %2 = vector.load %arg3[%c0_3, %c0_4] : memref<1x32xf32, #tpu.memory_space<vmem>>, vector<1x32xf32>
    %3 = vector.shape_cast %2 : vector<1x32xf32> to vector<1x32xf32>
    %4 = vector.broadcast %3 : vector<1x32xf32> to vector<8x32xf32>
    %5 = vector.extract_strided_slice %0 {offsets = [0, 0], sizes = [8, 1], strides = [1, 1]} : vector<8x4xf32> to vector<8x1xf32>
    %6 = vector.extract_strided_slice %1 {offsets = [0, 0], sizes = [1, 32], strides = [1, 1]} : vector<4x32xf32> to vector<1x32xf32>
    %7 = vector.broadcast %5 : vector<8x1xf32> to vector<8x32xf32>
    %8 = vector.broadcast %6 : vector<1x32xf32> to vector<8x32xf32>
    %9 = arith.mulf %7, %8 : vector<8x32xf32>
    %10 = arith.addf %4, %9 : vector<8x32xf32>
    %11 = vector.extract_strided_slice %0 {offsets = [0, 1], sizes = [8, 1], strides = [1, 1]} : vector<8x4xf32> to vector<8x1xf32>
    %12 = vector.extract_strided_slice %1 {offsets = [1, 0], sizes = [1, 32], strides = [1, 1]} : vector<4x32xf32> to vector<1x32xf32>
    %13 = vector.broadcast %11 : vector<8x1xf32> to vector<8x32xf32>
    %14 = vector.broadcast %12 : vector<1x32xf32> to vector<8x32xf32>
    %15 = arith.mulf %13, %14 : vector<8x32xf32>
    %16 = arith.addf %10, %15 : vector<8x32xf32>
    %17 = vector.extract_strided_slice %0 {offsets = [0, 2], sizes = [8, 1], strides = [1, 1]} : vector<8x4xf32> to vector<8x1xf32>
    %18 = vector.extract_strided_slice %1 {offsets = [2, 0], sizes = [1, 32], strides = [1, 1]} : vector<4x32xf32> to vector<1x32xf32>
    %19 = vector.broadcast %17 : vector<8x1xf32> to vector<8x32xf32>
    %20 = vector.broadcast %18 : vector<1x32xf32> to vector<8x32xf32>
    %21 = arith.mulf %19, %20 : vector<8x32xf32>
    %22 = arith.addf %16, %21 : vector<8x32xf32>
    %23 = vector.extract_strided_slice %0 {offsets = [0, 3], sizes = [8, 1], strides = [1, 1]} : vector<8x4xf32> to vector<8x1xf32>
    %24 = vector.extract_strided_slice %1 {offsets = [3, 0], sizes = [1, 32], strides = [1, 1]} : vector<4x32xf32> to vector<1x32xf32>
    %25 = vector.broadcast %23 : vector<8x1xf32> to vector<8x32xf32>
    %26 = vector.broadcast %24 : vector<1x32xf32> to vector<8x32xf32>
    %27 = arith.mulf %25, %26 : vector<8x32xf32>
    %28 = arith.addf %22, %27 : vector<8x32xf32>
    %c0_5 = arith.constant 0 : index
    %c0_6 = arith.constant 0 : index
    %c0_7 = arith.constant 0 : index
    %29 = vector.load %arg4[%c0_5, %c0_6, %c0_7] : memref<2x32x32xf32, #tpu.memory_space<vmem>>, vector<1x32x32xf32>
    %30 = vector.shape_cast %29 : vector<1x32x32xf32> to vector<32x32xf32>
    %cst = arith.constant dense<0.000000e+00> : vector<8x32xf32>
    %31 = tpu.matmul %28, %30, %cst {dimension_numbers = #tpu.dot_dimension_numbers<[1], [0], [0], [1], [0, 0, 1, 1], [], []>} : vector<8x32xf32>, vector<32x32xf32>, vector<8x32xf32> -> vector<8x32xf32>
    %c0_8 = arith.constant 0 : index
    %c0_9 = arith.constant 0 : index
    %c0_10 = arith.constant 0 : index
    %32 = vector.load %arg5[%c0_8, %c0_9, %c0_10] : memref<2x1x32xf32, #tpu.memory_space<vmem>>, vector<1x1x32xf32>
    %33 = vector.shape_cast %32 : vector<1x1x32xf32> to vector<1x32xf32>
    %34 = vector.broadcast %33 : vector<1x32xf32> to vector<8x32xf32>
    %35 = arith.addf %31, %34 : vector<8x32xf32>
    %cst_11 = arith.constant 0.000000e+00 : f32
    %36 = vector.broadcast %cst_11 : f32 to vector<8x32xf32>
    %37 = arith.maximumf %35, %36 : vector<8x32xf32>
    %38 = arith.addf %37, %28 : vector<8x32xf32>
    %c1 = arith.constant 1 : index
    %c0_12 = arith.constant 0 : index
    %c0_13 = arith.constant 0 : index
    %39 = vector.load %arg4[%c1, %c0_12, %c0_13] : memref<2x32x32xf32, #tpu.memory_space<vmem>>, vector<1x32x32xf32>
    %40 = vector.shape_cast %39 : vector<1x32x32xf32> to vector<32x32xf32>
    %cst_14 = arith.constant dense<0.000000e+00> : vector<8x32xf32>
    %41 = tpu.matmul %38, %40, %cst_14 {dimension_numbers = #tpu.dot_dimension_numbers<[1], [0], [0], [1], [0, 0, 1, 1], [], []>} : vector<8x32xf32>, vector<32x32xf32>, vector<8x32xf32> -> vector<8x32xf32>
    %c1_15 = arith.constant 1 : index
    %c0_16 = arith.constant 0 : index
    %c0_17 = arith.constant 0 : index
    %42 = vector.load %arg5[%c1_15, %c0_16, %c0_17] : memref<2x1x32xf32, #tpu.memory_space<vmem>>, vector<1x1x32xf32>
    %43 = vector.shape_cast %42 : vector<1x1x32xf32> to vector<1x32xf32>
    %44 = vector.broadcast %43 : vector<1x32xf32> to vector<8x32xf32>
    %45 = arith.addf %41, %44 : vector<8x32xf32>
    %cst_18 = arith.constant 0.000000e+00 : f32
    %46 = vector.broadcast %cst_18 : f32 to vector<8x32xf32>
    %47 = arith.maximumf %45, %46 : vector<8x32xf32>
    %48 = arith.addf %47, %38 : vector<8x32xf32>
    %c0_19 = arith.constant 0 : index
    %c0_20 = arith.constant 0 : index
    %49 = vector.load %arg6[%c0_19, %c0_20] : memref<32x3xf32, #tpu.memory_space<vmem>>, vector<32x3xf32>
    %cst_21 = arith.constant dense<0.000000e+00> : vector<8x3xf32>
    %50 = tpu.matmul %48, %49, %cst_21 {dimension_numbers = #tpu.dot_dimension_numbers<[1], [0], [0], [1], [0, 0, 1, 1], [], []>} : vector<8x32xf32>, vector<32x3xf32>, vector<8x3xf32> -> vector<8x3xf32>
    %c0_22 = arith.constant 0 : index
    %c0_23 = arith.constant 0 : index
    %51 = vector.load %arg7[%c0_22, %c0_23] : memref<1x3xf32, #tpu.memory_space<vmem>>, vector<1x3xf32>
    %52 = vector.broadcast %51 : vector<1x3xf32> to vector<8x3xf32>
    %53 = arith.addf %50, %52 : vector<8x3xf32>
    %c0_24 = arith.constant 0 : index
    %c0_25 = arith.constant 0 : index
    %54 = vector.load %arg8[%c0_24, %c0_25] : memref<8x3xf32, #tpu.memory_space<vmem>>, vector<8x3xf32>
    tpu.vector_store %arg8[%c0_24, %c0_25], %53 {strides = array<i32>} : memref<8x3xf32, #tpu.memory_space<vmem>>, vector<8x3xf32>,
    return
  }
  func.func @transform_0(%arg0: i32) -> (i32, i32) {
    %c0_i32 = arith.constant 0 : i32
    %c0_i32_0 = arith.constant 0 : i32
    return %arg0, %c0_i32 : i32, i32
  }
  func.func @transform_1(%arg0: i32) -> (i32, i32) {
    %c0_i32 = arith.constant 0 : i32
    %c0_i32_0 = arith.constant 0 : i32
    %c0_i32_1 = arith.constant 0 : i32
    return %c0_i32, %c0_i32_0 : i32, i32
  }
  func.func @transform_2(%arg0: i32) -> (i32, i32) {
    %c0_i32 = arith.constant 0 : i32
    %c0_i32_0 = arith.constant 0 : i32
    %c0_i32_1 = arith.constant 0 : i32
    return %c0_i32, %c0_i32_0 : i32, i32
  }
  func.func @transform_3(%arg0: i32) -> (i32, i32, i32) {
    %c0_i32 = arith.constant 0 : i32
    %c0_i32_0 = arith.constant 0 : i32
    %c0_i32_1 = arith.constant 0 : i32
    %c0_i32_2 = arith.constant 0 : i32
    return %c0_i32, %c0_i32_0, %c0_i32_1 : i32, i32, i32
  }
  func.func @transform_4(%arg0: i32) -> (i32, i32, i32) {
    %c0_i32 = arith.constant 0 : i32
    %c0_i32_0 = arith.constant 0 : i32
    %c0_i32_1 = arith.constant 0 : i32
    %c0_i32_2 = arith.constant 0 : i32
    return %c0_i32, %c0_i32_0, %c0_i32_1 : i32, i32, i32
  }
  func.func @transform_5(%arg0: i32) -> (i32, i32) {
    %c0_i32 = arith.constant 0 : i32
    %c0_i32_0 = arith.constant 0 : i32
    %c0_i32_1 = arith.constant 0 : i32
    return %c0_i32, %c0_i32_0 : i32, i32
  }
  func.func @transform_6(%arg0: i32) -> (i32, i32) {
    %c0_i32 = arith.constant 0 : i32
    %c0_i32_0 = arith.constant 0 : i32
    %c0_i32_1 = arith.constant 0 : i32
    return %c0_i32, %c0_i32_0 : i32, i32
  }
  func.func @transform_7(%arg0: i32) -> (i32, i32) {
    %c0_i32 = arith.constant 0 : i32
    %c0_i32_0 = arith.constant 0 : i32
    return %arg0, %c0_i32 : i32, i32
  }
}

</mosaic_0001>

<bundles_post_ra>
// kernel: tpu_custom_call.1
= control target key start
LH: loop header
LB: loop body
LE: loop exit
PB: predicated region body
PF: predicated region fallthrough
CT: control target
= control target key end

     0   :  { %12 = vsyncpa [#allocation3], 0  ;;  %s631_s24 = smov 0   ;;  %s688_s0 = inlined_call_operand.vmem [shape: f32[16,4], index: 0, kind: input, shape index: {}]   ;;  %s689_s1 = inlined_call_operand.vmem [shape: f32[4,32], index: 1, kind: input, shape index: {}]   ;;  %s690_s2 = inlined_call_operand.vmem [shape: f32[1,32], index: 2, kind: input, shape index: {}]   ;;  %s691_s3 = inlined_call_operand.hbm [shape: f32[2,32,32], index: 3, kind: input, shape index: {}]   ;;  %s692_s4 = inlined_call_operand.vmem [shape: f32[2,1,32], index: 4, kind: input, shape index: {}]   ;;  %s693_s5 = inlined_call_operand.vmem [shape: f32[32,3], index: 5, kind: input, shape index: {}]   ;;  %s694_s6 = inlined_call_operand.vmem [shape: f32[1,3], index: 6, kind: input, shape index: {}]   ;;  %s695_s7 = inlined_call_operand.vmem [shape: f32[16,3], index: 7, kind: output, shape index: {}]  }
   0x1 LB: > { %s218_s27 = sshll.u32 %s691_s3, 4  ;;  %s493_s28 = sadd.s32 4294967295, %s582_s24   ;;  %s582_s24 = sphi %s631_s24, %s18_s24   ;;  %s219_s27 = int_to_ptr.hbm [resolvable:$true] %s218_s27 }
   0x2   : > { %p495_p0 = scmp.ge.s32.totalorder %s582_s24, 1  ;;  %p201_p1 = scmp.lt.s32.totalorder %s582_s24, 3 }
   0x3   : > { %p516_p2 = scmp.eq.s32.totalorder %s493_s28, 0  ;;  %s584_s29 = smov [#allocation2]  }
   0x4   : > { %p202_p3 = pnand %p495_p0, %p201_p1  ;;  %s220_s30 = sshll.u32 %s584_s29, 4  ;;  %s221_s30 = int_to_ptr.vmem [resolvable:$true] %s220_s30 }
   0x5   : > { %s585_s8 = smov 128   ;;  %s586_s9 = smov 8  }
   0x6   : > { %p512_p4 = pneg %p202_p3  ;;  %252 = sbr.rel (%p202_p3) target bundleno = 549 (0x225), region = 48 }
   0x8   : > { %p513_p5 = pnand %p516_p2, %p512_p4 }
   0xa   : > { %515 = dma.hbm_to_vmem [thread:$0]  (!%p513_p5), %s219_s27, 1024, %s221_s30, [#allocation3], %s585_s8, %s585_s8, %s586_s9  }
   0xb   : > { %577 = dma.done.wait (%p516_p2), [#allocation3], 1024  }
   0xc   : > { %579 = vsyncadd (%p516_p2), [#allocation3], 4294966272  ;;  %p283_p6 = scmp.lt.s32.totalorder %s493_s28, 1  ;;  %v587_v0 = vmov 0   ;;  %v588_v1 = vmov 2   ;;  %v589_v3 = vmov 1  }
   0xd   : > { %533 = vset.pattern.permute.xlu0 %v587_v0  ;;  %535 = vset.pattern.permute.xlu1 %v588_v1  ;;  %v590_v4 = vmov 3   ;;  %v329_v5 = vld [vmem:[#allocation2 + $0x18] sm:$0xff]  ;;  %v328_v6 = vld [vmem:[#allocation2 + $0x10] sm:$0xff]  ;;  %v327_v7 = vld [vmem:[#allocation2 + $0x8] sm:$0xff]  ;;  %vm334_vm0 = vcmask 261120   ;;  %vm426_vm1 = vcmask 23552  }
   0xe   : > { %s697_s28 = smov (!%p283_p6, %s493_s28), 1  ;;  %350 = vmatpush.msra.mxu0 %v329_v5  ;;  %v326_v8 = vld [vmem:[#allocation2] sm:$0xff]  ;;  %v364_v27 = vld [vmem:[#allocation2 + $0x38] sm:$0xff]  ;;  %v363_v28 = vld [vmem:[#allocation2 + $0x30] sm:$0xff] }
   0xf   : > { %s500_s10 = sshll.u32 %s697_s28, 3  ;;  %v292_v9 = vld [vmem:[%s689_s1] sm:$0xf]  ;;  %385 = vmatpush.msra.mxu1 %v364_v27  ;;  %v362_v29 = vld [vmem:[#allocation2 + $0x28] sm:$0xff]  ;;  %v398_v36 = vld [vmem:[%s693_s5 + $0x18] sm:$0xff] }
  0x10   : > { %s286_s13 = scalar_lea.vmem %s688_s0, %s500_s10  ;;  %351 = vmatpush.msra.mxu0 %v328_v6  ;;  %v302_v12 = vperm.slane %v292_v9, 0  ;;  %v538_v13 = vld [vmem:[%s690_s2] ss:$0 sm:$0xff]  ;;  %v309_v15 = vperm.slane %v292_v9, 1  ;;  %v316_v16 = vperm.slane %v292_v9, 2  ;;  %v323_v17 = vperm.slane %v292_v9, 3  ;;  %418 = vmatpush.msra.mxu2 %v398_v36  ;;  %s290_s14 = scalar_lea.vmem %s695_s7, %s500_s10 }
  0x11   : > { %v291_v2 = vld [vmem:[%s286_s13] sm:$0xff]  ;;  %386 = vmatpush.msra.mxu1 %v363_v28  ;;  %v397_v37 = vld [vmem:[%s693_s5 + $0x10] sm:$0xff]  ;;  %v396_v38 = vld [vmem:[%s693_s5 + $0x8] sm:$0xff] }
  0x12   : > { %299 = vperm.xlu0 %533, %v291_v2   ;;  %313 = vperm.xlu1 %535, %v291_v2   ;;  %v361_v30 = vld [vmem:[#allocation2 + $0x20] sm:$0xff] }
  0x13   : > { %352 = vmatpush.msra.mxu0 %v327_v7  ;;  %387 = vmatpush.msra.mxu1 %v362_v29  ;;  %v539_v31 = vld [vmem:[%s692_s4] ss:$0 sm:$0xff]  ;;  %v540_v40 = vld [vmem:[%s692_s4 + $0x1] ss:$0 sm:$0xff] }
  0x14   : > { %419 = vmatpush.msra.mxu2 %v397_v37  ;;  %v395_v39 = vld [vmem:[%s693_s5] sm:$0xff] }
  0x15   : > { %353 = vmatpush.msra.mxu0 %v326_v8  ;;  %388 = vmatpush.msra.mxu1 %v361_v30  ;;  %v541_v45 = vld [vmem:[%s694_s6] ss:$0 sm:$0xff] }
  0x16   : > { %420 = vmatpush.msra.mxu2 %v396_v38 }
  0x18   : > { %421 = vmatpush.msra.mxu2 %v395_v39 }
  0x1a   : > { %534 = vset.pattern.permute.xlu0 %v589_v3  ;;  %536 = vset.pattern.permute.xlu1 %v590_v4 }
  0x1b   : > { %306 = vperm.xlu0 %534, %v291_v2   ;;  %320 = vperm.xlu1 %536, %v291_v2  }
  0x23   : > { %537 = vset.pattern.permute.xlu0 %v590_v4 }
  0x84   : > { %v300_v10 = vpop.permute.xlu0 %299  ;;  %v314_v11 = vpop.permute.xlu1 %313 }
  0x85   : > { %v303_v14 = vmul.f32 %v302_v12, %v300_v10  ;;  %v317_v22 = vmul.f32 %v316_v16, %v314_v11 }
  0x87   : > { %v304_v20 = vadd.f32 %v538_v13, %v303_v14 }
  0x8d   : > { %v307_v18 = vpop.permute.xlu0 %306  ;;  %v321_v19 = vpop.permute.xlu1 %320 }
  0x8e   : > { %v310_v21 = vmul.f32 %v309_v15, %v307_v18  ;;  %v324_v24 = vmul.f32 %v323_v17, %v321_v19 }
  0x90   : > { %v311_v23 = vadd.f32 %v310_v21, %v304_v20 }
  0x92   : > { %v318_v25 = vadd.f32 %v317_v22, %v311_v23 }
  0x94   : > { %v325_v26 = vadd.f32 %v324_v24, %v318_v25 }
  0x96   : > { %502 = vmatmul.msk.f32.vlgmr.msra.gmra.mxu0 %vm334_vm0, %v325_v26 }
 0x113   : > { %v355_v32 = vpop.f32.mrf.mxu0 }
 0x114   : > { %v356_v33 = vadd.f32 %v539_v31, %v355_v32 }
 0x116   : > { %v358_v34 = vmax.f32 %v356_v33, 0.0 }
 0x118   : > { %v359_v35 = vadd.f32 %v358_v34, %v325_v26 }
 0x11a   : > { %504 = vmatmul.msk.f32.vlgmr.msra.gmra.mxu1 %vm334_vm0, %v359_v35 }
 0x197   : > { %v390_v41 = vpop.f32.mrf.mxu1 }
 0x198   : > { %v391_v42 = vadd.f32 %v540_v40, %v390_v41 }
 0x19a   : > { %v393_v43 = vmax.f32 %v391_v42, 0.0 }
 0x19c   : > { %v394_v44 = vadd.f32 %v393_v43, %v359_v35 }
 0x19e   : > { %505 = vmatmul.msk.f32.vlgmr.msra.gmra.mxu2 %vm334_vm0, %v394_v44 }
 0x221   : > { %v423_v46 = vpop.f32.mrf.mxu2 }
 0x222   : > { %v424_v47 = vadd.f32 %v541_v45, %v423_v46 }
 0x224   : > { %427 = vst.msk [vmem:[%s290_s14] sm:$0xff] %vm426_vm1, %v424_v47 }
 0x225 PF: > { %s18_s24 = sadd.s32 1, %s582_s24  }
 0x226   : > { %p15_p7 = scmp.ge.s32.totalorder %s18_s24, 4  }
 0x228   :  { %17 = sbr.rel (!%p15_p7) target bundleno = 1 (0x1), region = 85 }
 0x22d   :  { %447 = vsyncpa [#allocation3], 1 }
 0x22e   :  { %449 = vsyncpa [#allocation3 + $0x1], 1 }

</bundles_post_ra>
